<compile_context>
chip_gen: v7x
topology: tpu7x:2x2x1
jax: 0.10.0
libtpu: 0.0.40
codegen_flags: <defaults>
</compile_context>

<pallas_src>
import jax
import jax.numpy as jnp
from jax.experimental import pallas as pl
from jax.experimental.pallas import tpu as pltpu

# ---- problem configuration (small, consistent with the module) --------------
CLASS_NUM = 4
SHOT_NUM_PER_CLASS = 2
VALIDATION_QUERY_NUM_PER_CLASS = 3
IMG_C, IMG_H, IMG_W = 3, 16, 16
FEAT_DIM = 128          # FEM output feature dim D
HIDDEN = 64             # TRM hidden dim
AGGREGATION = "proto_mean"   # args.aggregation


# --------------------- fused FEM + aggregation + TRM kernel ------------------
def _make_fused_kernel(n_support, n_classes, shots, hidden, agg_scale):
    def kernel(x_ref, wf_ref, bf_ref, wcat_ref, b1_ref, w2t_ref, b2_ref, o_ref):
        # ---- FEM: linear embedding + ReLU (bf16 MXU operands, f32 accumulate)
        feats = jnp.dot(x_ref[...], wf_ref[...],
                        preferred_element_type=jnp.float32)           # (N, D)
        feats = jnp.maximum(feats + bf_ref[...], 0.0)                 # f32

        # ---- TRM layer 1: ONE lane-dense (N, D) @ (D, 2H) MXU op.
        # wcat = [w1_s | w1_q]; the concat-pair matmul of TRN.forward is
        # recovered as hcat[support, :H] (support half) + hcat[query, H:]
        # (query half) — the cross terms are simply never read.
        hcat = jnp.dot(feats.astype(wcat_ref.dtype), wcat_ref[...],
                       preferred_element_type=jnp.float32)            # (N, 2H)

        # ---- shot aggregation AFTER the matmul (equivalent math; tiny add)
        h_sup = hcat[:n_support, :hidden].reshape(n_classes, shots, hidden)
        h_s = jnp.sum(h_sup, axis=1) * agg_scale                      # (C, H)
        h_q = hcat[n_support:, hidden:]                               # (Q, H)

        # ---- TRM layer 2 + sigmoid (all f32 elementwise)
        h = h_s[None, :, :] + h_q[:, None, :] + b1_ref[...][None, :, :]
        h = jnp.maximum(h, 0.0)                                       # (Q, C, H)
        logits = jnp.sum(h * w2t_ref[...][None, :, :], axis=-1) + b2_ref[0, 0]
        o_ref[...] = pl.reciprocal(1.0 + jnp.exp(-logits), approx=True)

    return kernel


def trn_relations_fused(x_flat, w_fem, b_fem, wcat, b1, w2t, b2,
                        n_classes, shots, scale):
    n, chw = x_flat.shape
    d = w_fem.shape[1]
    h2 = wcat.shape[1]
    hidden = h2 // 2
    n_support = n_classes * shots
    q = n - n_support

    kernel = _make_fused_kernel(n_support, n_classes, shots, hidden, float(scale))
    return pl.pallas_call(
        kernel,
        out_shape=jax.ShapeDtypeStruct((q, n_classes), jnp.float32),
        in_specs=[
            pl.BlockSpec((n, chw), lambda: (0, 0)),        # flattened images (bf16)
            pl.BlockSpec((chw, d), lambda: (0, 0)),        # FEM weight (bf16)
            pl.BlockSpec((1, d), lambda: (0, 0)),          # FEM bias (f32)
            pl.BlockSpec((d, h2), lambda: (0, 0)),         # [w1_s | w1_q] (bf16)
            pl.BlockSpec((1, hidden), lambda: (0, 0)),     # TRM bias 1 (f32)
            pl.BlockSpec((1, hidden), lambda: (0, 0)),     # TRM layer-2 weight^T
            pl.BlockSpec(memory_space=pltpu.MemorySpace.SMEM),  # b2 scalar
        ],
        out_specs=pl.BlockSpec((q, n_classes), lambda: (0, 0)),
    )(x_flat, w_fem, b_fem, wcat, b1, w2t, b2)


# ------------------------------- forward -------------------------------------
def trn_forward(images, params):
    n = images.shape[0]
    x_flat = images.reshape(n, -1)                                  # NCHW flatten
    n_support = CLASS_NUM * SHOT_NUM_PER_CLASS

    if AGGREGATION in ("proto_sum", "proto_mean") and SHOT_NUM_PER_CLASS > 1:
        n_classes, shots = CLASS_NUM, SHOT_NUM_PER_CLASS
        scale = (1.0 / SHOT_NUM_PER_CLASS) if AGGREGATION == "proto_mean" else 1.0
    else:
        # no aggregation: every support example becomes its own "class row"
        n_classes, shots, scale = n_support, 1, 1.0

    # bf16 MXU operands (f32 accumulation inside the kernel); elementwise stays f32.
    x_bf16 = x_flat.astype(jnp.bfloat16)
    wf_bf16 = params["w_fem"].astype(jnp.bfloat16)
    wcat_bf16 = jnp.concatenate([params["w1_s"], params["w1_q"]],
                                axis=1).astype(jnp.bfloat16)          # (D, 2H)

    return trn_relations_fused(
        x_bf16, wf_bf16, params["b_fem"], wcat_bf16,
        params["b1"], params["w2t"], params["b2"],
        n_classes, shots, scale)


# --------------------------- pure-JAX reference -------------------------------
def trn_reference(images, params):
    n = images.shape[0]
    x_flat = images.reshape(n, -1)
    feats = jnp.maximum(x_flat @ params["w_fem"] + params["b_fem"], 0.0)
    n_support = CLASS_NUM * SHOT_NUM_PER_CLASS
    sup = feats[:n_support].reshape(CLASS_NUM, SHOT_NUM_PER_CLASS, -1)
    proto = sup.mean(axis=1) if AGGREGATION == "proto_mean" else sup.sum(axis=1)
    qry = feats[n_support:]
    q, c, d = qry.shape[0], proto.shape[0], proto.shape[1]
    sup_ext = jnp.broadcast_to(proto[None], (q, c, d))
    qry_ext = jnp.broadcast_to(qry[:, None], (q, c, d))
    pairs = jnp.concatenate([sup_ext, qry_ext], axis=2)
    w1 = jnp.concatenate([params["w1_s"], params["w1_q"]], axis=0)
    h = jnp.maximum(pairs @ w1 + params["b1"][0], 0.0)
    logits = jnp.sum(h * params["w2t"][0], axis=-1) + params["b2"][0, 0]
    return jax.nn.sigmoid(logits)


# ---------------------------------- main --------------------------------------
if __name__ == "__main__":
    key = jax.random.PRNGKey(0)
    k_img, k_wf, k_bf, k_w1, k_b1, k_w2, k_b2 = jax.random.split(key, 7)

    n_images = CLASS_NUM * SHOT_NUM_PER_CLASS + CLASS_NUM * VALIDATION_QUERY_NUM_PER_CLASS
    images = jax.random.normal(k_img, (n_images, IMG_C, IMG_H, IMG_W), jnp.float32)

    chw = IMG_C * IMG_H * IMG_W
    w1_full = 0.05 * jax.random.normal(k_w1, (2 * FEAT_DIM, HIDDEN), jnp.float32)
    params = {
        "w_fem": 0.05 * jax.random.normal(k_wf, (chw, FEAT_DIM), jnp.float32),
        "b_fem": 0.05 * jax.random.normal(k_bf, (1, FEAT_DIM), jnp.float32),
        # TRM first-layer weight (2D, HIDDEN) pre-split into support/query halves
        "w1_s": w1_full[:FEAT_DIM],
        "w1_q": w1_full[FEAT_DIM:],
        "b1": 0.05 * jax.random.normal(k_b1, (1, HIDDEN), jnp.float32),
        # TRM second-layer weight (HIDDEN, 1) stored transposed as (1, HIDDEN)
        "w2t": 0.05 * jax.random.normal(k_w2, (1, HIDDEN), jnp.float32),
        "b2": 0.05 * jax.random.normal(k_b2, (1, 1), jnp.float32),
    }

    relations = jax.block_until_ready(trn_forward(images, params))
    expected = trn_reference(images, params)

    assert relations.shape == (CLASS_NUM * VALIDATION_QUERY_NUM_PER_CLASS, CLASS_NUM)
    # Tolerance relaxed vs. the pure-f32 reference because MXU operands are bf16
    # (f32 accumulation) and the final divide uses the EUP approx reciprocal.
    assert jnp.allclose(relations, expected, atol=2e-2, rtol=2e-2)
    print("KERNEL_OK")
</pallas_src>

<mosaic_0001>
module attributes {stable_mosaic.version = 11 : i64} {
  func.func @kernel(%arg0: memref<20x768xbf16, #tpu.memory_space<vmem>>, %arg1: memref<768x128xbf16, #tpu.memory_space<vmem>>, %arg2: memref<1x128xf32, #tpu.memory_space<vmem>>, %arg3: memref<128x128xbf16, #tpu.memory_space<vmem>>, %arg4: memref<1x64xf32, #tpu.memory_space<vmem>>, %arg5: memref<1x64xf32, #tpu.memory_space<vmem>>, %arg6: memref<1x1xf32, #tpu.memory_space<smem>>, %arg7: memref<12x4xf32, #tpu.memory_space<vmem>>) attributes {dimension_semantics = [], scalar_prefetch = 0 : i64, scratch_operands = 0 : i64, tpu.core_type = #tpu.core_type<tc>} {
    %c0 = arith.constant 0 : index
    %c0_0 = arith.constant 0 : index
    %0 = vector.load %arg0[%c0, %c0_0] : memref<20x768xbf16, #tpu.memory_space<vmem>>, vector<20x768xbf16>
    %c0_1 = arith.constant 0 : index
    %c0_2 = arith.constant 0 : index
    %1 = vector.load %arg1[%c0_1, %c0_2] : memref<768x128xbf16, #tpu.memory_space<vmem>>, vector<768x128xbf16>
    %cst = arith.constant dense<0.000000e+00> : vector<20x128xf32>
    %2 = tpu.matmul %0, %1, %cst {dimension_numbers = #tpu.dot_dimension_numbers<[1], [0], [0], [1], [0, 0, 1, 1], [], []>} : vector<20x768xbf16>, vector<768x128xbf16>, vector<20x128xf32> -> vector<20x128xf32>
    %c0_3 = arith.constant 0 : index
    %c0_4 = arith.constant 0 : index
    %3 = vector.load %arg2[%c0_3, %c0_4] : memref<1x128xf32, #tpu.memory_space<vmem>>, vector<1x128xf32>
    %4 = vector.broadcast %3 : vector<1x128xf32> to vector<20x128xf32>
    %5 = arith.addf %2, %4 : vector<20x128xf32>
    %cst_5 = arith.constant 0.000000e+00 : f32
    %6 = vector.broadcast %cst_5 : f32 to vector<20x128xf32>
    %7 = arith.maximumf %5, %6 : vector<20x128xf32>
    %8 = arith.truncf %7 : vector<20x128xf32> to vector<20x128xbf16>
    %c0_6 = arith.constant 0 : index
    %c0_7 = arith.constant 0 : index
    %9 = vector.load %arg3[%c0_6, %c0_7] : memref<128x128xbf16, #tpu.memory_space<vmem>>, vector<128x128xbf16>
    %cst_8 = arith.constant dense<0.000000e+00> : vector<20x128xf32>
    %10 = tpu.matmul %8, %9, %cst_8 {dimension_numbers = #tpu.dot_dimension_numbers<[1], [0], [0], [1], [0, 0, 1, 1], [], []>} : vector<20x128xbf16>, vector<128x128xbf16>, vector<20x128xf32> -> vector<20x128xf32>
    %11 = vector.extract_strided_slice %10 {offsets = [0, 0], sizes = [8, 64], strides = [1, 1]} : vector<20x128xf32> to vector<8x64xf32>
    %12 = vector.shape_cast %11 : vector<8x64xf32> to vector<4x2x64xf32>
    %cst_9 = arith.constant dense<0.000000e+00> : vector<4x64xf32>
    %13 = vector.multi_reduction <add>, %12, %cst_9 [1] : vector<4x2x64xf32> to vector<4x64xf32>
    %cst_10 = arith.constant 5.000000e-01 : f32
    %14 = vector.broadcast %cst_10 : f32 to vector<4x64xf32>
    %15 = arith.mulf %13, %14 : vector<4x64xf32>
    %16 = vector.extract_strided_slice %10 {offsets = [8, 64], sizes = [12, 64], strides = [1, 1]} : vector<20x128xf32> to vector<12x64xf32>
    %17 = vector.shape_cast %15 : vector<4x64xf32> to vector<1x4x64xf32>
    %18 = vector.shape_cast %16 : vector<12x64xf32> to vector<12x1x64xf32>
    %19 = vector.broadcast %17 : vector<1x4x64xf32> to vector<12x4x64xf32>
    %20 = vector.broadcast %18 : vector<12x1x64xf32> to vector<12x4x64xf32>
    %21 = arith.addf %19, %20 : vector<12x4x64xf32>
    %c0_11 = arith.constant 0 : index
    %c0_12 = arith.constant 0 : index
    %22 = vector.load %arg4[%c0_11, %c0_12] : memref<1x64xf32, #tpu.memory_space<vmem>>, vector<1x64xf32>
    %23 = vector.shape_cast %22 : vector<1x64xf32> to vector<1x1x64xf32>
    %24 = vector.broadcast %23 : vector<1x1x64xf32> to vector<12x4x64xf32>
    %25 = arith.addf %21, %24 : vector<12x4x64xf32>
    %cst_13 = arith.constant 0.000000e+00 : f32
    %26 = vector.broadcast %cst_13 : f32 to vector<12x4x64xf32>
    %27 = arith.maximumf %25, %26 : vector<12x4x64xf32>
    %c0_14 = arith.constant 0 : index
    %c0_15 = arith.constant 0 : index
    %28 = vector.load %arg5[%c0_14, %c0_15] : memref<1x64xf32, #tpu.memory_space<vmem>>, vector<1x64xf32>
    %29 = vector.shape_cast %28 : vector<1x64xf32> to vector<1x1x64xf32>
    %30 = vector.broadcast %29 : vector<1x1x64xf32> to vector<12x4x64xf32>
    %31 = arith.mulf %27, %30 : vector<12x4x64xf32>
    %cst_16 = arith.constant dense<0.000000e+00> : vector<12x4xf32>
    %32 = vector.multi_reduction <add>, %31, %cst_16 [2] : vector<12x4x64xf32> to vector<12x4xf32>
    %c0_17 = arith.constant 0 : index
    %c0_18 = arith.constant 0 : index
    %33 = memref.load %arg6[%c0_17, %c0_18] : memref<1x1xf32, #tpu.memory_space<smem>>
    %34 = vector.broadcast %33 : f32 to vector<12x4xf32>
    %35 = arith.addf %32, %34 : vector<12x4xf32>
    %cst_19 = arith.constant 0.000000e+00 : f32
    %36 = vector.broadcast %cst_19 : f32 to vector<12x4xf32>
    %37 = arith.subf %36, %35 : vector<12x4xf32>
    %38 = math.exp %37 : vector<12x4xf32>
    %cst_20 = arith.constant 1.000000e+00 : f32
    %39 = vector.broadcast %cst_20 : f32 to vector<12x4xf32>
    %40 = arith.addf %39, %38 : vector<12x4xf32>
    %41 = tpu.reciprocal %40 {approx = true} : vector<12x4xf32> -> vector<12x4xf32>
    %c0_21 = arith.constant 0 : index
    %c0_22 = arith.constant 0 : index
    %42 = vector.load %arg7[%c0_21, %c0_22] : memref<12x4xf32, #tpu.memory_space<vmem>>, vector<12x4xf32>
    tpu.vector_store %arg7[%c0_21, %c0_22], %41 {strides = array<i32>} : memref<12x4xf32, #tpu.memory_space<vmem>>, vector<12x4xf32>,
    return
  }
}

</mosaic_0001>

<bundles_post_ra>
// kernel: tpu_custom_call.1
= control target key start
LH: loop header
LB: loop body
LE: loop exit
PB: predicated region body
PF: predicated region fallthrough
CT: control target
= control target key end

     0   :  { %13 = vsyncpa [#allocation4], 0  ;;  %s2457_s0 = inlined_call_operand.hbm [shape: bf16[20,768], index: 0, kind: input, shape index: {}]   ;;  %s2458_s1 = inlined_call_operand.hbm [shape: bf16[768,128], index: 1, kind: input, shape index: {}]   ;;  %s2459_s2 = inlined_call_operand.vmem [shape: f32[1,128], index: 2, kind: input, shape index: {}]   ;;  %s2460_s3 = inlined_call_operand.hbm [shape: bf16[128,128], index: 3, kind: input, shape index: {}]   ;;  %s2461_s4 = inlined_call_operand.vmem [shape: f32[1,64], index: 4, kind: input, shape index: {}]   ;;  %s2462_s5 = inlined_call_operand.vmem [shape: f32[1,64], index: 5, kind: input, shape index: {}]   ;;  %s2463_s6 = inlined_call_operand.<no memory space> [shape: f32[1,1], index: 6, kind: input, shape index: {}]   ;;  %s2464_s7 = inlined_call_operand.vmem [shape: f32[12,4], index: 7, kind: output, shape index: {}]  }
   0x1   :  { %14 = vsyncpa [#allocation6], 0  ;;  %s1918_s24 = smov [#allocation5]   ;;  %s1848_s28 = scalar_lea.hbm %s2458_s1, 6144 }
   0x2   :  { %s32_s25 = sshll.u32 %s1918_s24, 4  ;;  %p1849_p0 = scmp.ne.s32.totalorder %s2458_s1, %s1848_s28  ;;  %s33_s25 = int_to_ptr.vmem [resolvable:$true] %s32_s25 }
   0x3   :  { %p1852_p1 = scmp.lt.u32.totalorder %s1848_s28, %s2458_s1 }
   0x5   :  { %p1854_p2 = pnand %p1852_p1, %p1849_p0 }
   0x7   :  { %1857 = shalt.err (!%p1854_p2)
}
   0x8   :  { %s1858_s10 = scalar_lea.vmem %s33_s25, 6144  ;;  %p1863_p4 = scmp.lt.s32.totalorder %s33_s25, %s33_s25 }
   0x9   :  { %p1859_p3 = scmp.ne.s32.totalorder %s33_s25, %s1858_s10  ;;  %p1864_p5 = scmp.lt.s32.totalorder %s1858_s10, %s1858_s10 }
   0xb   :  { %p1865_p6 = por %p1864_p5, %p1863_p4 }
   0xd   :  { %p1866_p7 = pnand %p1865_p6, %p1859_p3 }
   0xf   :  { %1869 = shalt.err (!%p1866_p7)
}
  0x10   :  { %s1919_s11 = smov 64   ;;  %s1920_s12 = smov 4  }
  0x11   :  { %38 = dma.hbm_to_vmem [thread:$0]  %s2458_s1, 6144, %s33_s25, [#allocation6], %s1919_s11, %s1919_s11, %s1920_s12  }
  0x12   :  { %s1921_s15 = smov [#allocation3]   ;;  %s1870_s19 = scalar_lea.hbm %s2457_s0, 1152 }
  0x13   :  { %s20_s16 = sshll.u32 %s1921_s15, 4  ;;  %p1871_p8 = scmp.ne.s32.totalorder %s2457_s0, %s1870_s19  ;;  %s21_s16 = int_to_ptr.vmem [resolvable:$true] %s20_s16 }
  0x14   :  { %p1874_p9 = scmp.lt.u32.totalorder %s1870_s19, %s2457_s0 }
  0x16   :  { %p1876_p10 = pnand %p1874_p9, %p1871_p8 }
  0x18   :  { %1879 = shalt.err (!%p1876_p10)
}
  0x19   :  { %s1880_s24 = scalar_lea.vmem %s21_s16, 1152  ;;  %p1885_p12 = scmp.lt.s32.totalorder %s21_s16, %s21_s16 }
  0x1a   :  { %p1881_p11 = scmp.ne.s32.totalorder %s21_s16, %s1880_s24  ;;  %p1886_p13 = scmp.lt.s32.totalorder %s1880_s24, %s1880_s24 }
  0x1c   :  { %p1887_p0 = por %p1886_p13, %p1885_p12 }
  0x1e   :  { %p1888_p1 = pnand %p1887_p0, %p1881_p11 }
  0x20   :  { %1891 = shalt.err (!%p1888_p1)
}
  0x21   :  { %s1922_s1 = smov 384   ;;  %s1923_s25 = smov 24  }
  0x22   :  { %26 = dma.hbm_to_vmem [thread:$0]  %s2457_s0, 1152, %s21_s16, [#allocation4], %s1922_s1, %s1922_s1, %s1923_s25  }
  0x23   :  { %s1924_s28 = smov [#allocation7]   ;;  %s1892_s9 = scalar_lea.hbm %s2460_s3, 1024 }
  0x24   :  { %s46_s29 = sshll.u32 %s1924_s28, 4  ;;  %p1893_p2 = scmp.ne.s32.totalorder %s2460_s3, %s1892_s9  ;;  %s47_s29 = int_to_ptr.vmem [resolvable:$true] %s46_s29 }
  0x25   :  { %p1896_p3 = scmp.lt.u32.totalorder %s1892_s9, %s2460_s3 }
  0x27   :  { %p1898_p4 = pnand %p1896_p3, %p1893_p2 }
  0x29   :  { %1901 = shalt.err (!%p1898_p4)
}
  0x2a   :  { %s1902_s17 = scalar_lea.vmem %s47_s29, 1024  ;;  %p1907_p6 = scmp.lt.s32.totalorder %s47_s29, %s47_s29 }
  0x2b   :  { %p1903_p5 = scmp.ne.s32.totalorder %s47_s29, %s1902_s17  ;;  %p1908_p7 = scmp.lt.s32.totalorder %s1902_s17, %s1902_s17 }
  0x2d   :  { %p1909_p8 = por %p1908_p7, %p1907_p6 }
  0x2f   :  { %p1910_p9 = pnand %p1909_p8, %p1903_p5 }
  0x31   :  { %1913 = shalt.err (!%p1910_p9)
}
  0x32   :  { %52 = dma.hbm_to_vmem [thread:$0]  %s2460_s3, 1024, %s47_s29, [#allocation6], %s1919_s11, %s1919_s11, %s1920_s12  }
  0x33   :  { %1914 = dma.done.wait [#allocation4], 1152  }
  0x34   :  { %1915 = vsyncadd [#allocation4], 4294966144 }
  0x35   :  { %1916 = dma.done.wait [#allocation6], 7168  }
  0x36   :  { %1917 = vsyncadd [#allocation6], 4294960128  ;;  %v1729_v0 = vld [vmem:[#allocation5 + $0x40] sm:$0xff]   ;;  %v1733_v4 = vld [vmem:[#allocation5 + $0x48] sm:$0xff]   ;;  %vm803_vm0 = vcmask 517120   ;;  %vm1250_vm1 = vcmask 1041409  }
  0x37   :  { %v1730_v1 = vld [vmem:[#allocation5] sm:$0xff]   ;;  %1606 = vmatprep.subr.bf16.mxu0 %v1729_v0  ;;  %v1734_v5 = vld [vmem:[#allocation5 + $0x8] sm:$0xff]   ;;  %v1737_v8 = vld [vmem:[#allocation5 + $0x50] sm:$0xff]   ;;  %vm1253_vm2 = vcmask 1042434   ;;  %vm1256_vm3 = vcmask 1043459   ;;  %vm1336_vm4 = vcmask 519168  }
  0x38   :  { %v1731_v2 = vld [vmem:[#allocation5 + $0xc0] sm:$0xff]   ;;  %1607 = vmatpush3.bf16.msra.mxu0 %v1730_v1  ;;  %v1735_v6 = vld [vmem:[#allocation5 + $0xc8] sm:$0xff]   ;;  %v1738_v9 = vld [vmem:[#allocation5 + $0x10] sm:$0xff]   ;;  %vm1512_vm5 = vcmask 1044484   ;;  %vm1514_vm6 = vcmask 1045509   ;;  %vm1516_vm7 = vcmask 1046534  }
  0x39   :  { %v1732_v3 = vld [vmem:[#allocation5 + $0x80] sm:$0xff]   ;;  %1634 = vmatprep.subr.bf16.mxu1 %v1731_v2  ;;  %1608 = vmatprep.subr.bf16.mxu0 %v1733_v4  ;;  %v1736_v7 = vld [vmem:[#allocation5 + $0x88] sm:$0xff]   ;;  %v1739_v10 = vld [vmem:[#allocation5 + $0xd0] sm:$0xff]   ;;  %vm1518_vm8 = vcmask 1047559   ;;  %vm1525_vm9 = vcmask 31744   ;;  %vm1527_vm10 = vcmask 27648  }
  0x3a   :  { %1635 = vmatpush3.bf16.msra.mxu1 %v1732_v3  ;;  %v1740_v11 = vld [vmem:[#allocation5 + $0x90] sm:$0xff]   ;;  %v1741_v12 = vld [vmem:[#allocation5 + $0x58] sm:$0xff]   ;;  %v1745_v16 = vld [vmem:[#allocation5 + $0x60] sm:$0xff]  }
  0x3b   :  { %1636 = vmatprep.subr.bf16.mxu1 %v1735_v6  ;;  %v1742_v13 = vld [vmem:[#allocation5 + $0x18] sm:$0xff]   ;;  %v1746_v17 = vld [vmem:[#allocation5 + $0x20] sm:$0xff]   ;;  %v1749_v20 = vld [vmem:[#allocation5 + $0x68] sm:$0xff]  }
  0x3c   :  { %1609 = vmatpush3.bf16.msra.mxu0 %v1734_v5  ;;  %v1743_v14 = vld [vmem:[#allocation5 + $0xd8] sm:$0xff]   ;;  %v1747_v18 = vld [vmem:[#allocation5 + $0xe0] sm:$0xff]   ;;  %v1750_v21 = vld [vmem:[#allocation5 + $0x28] sm:$0xff]  }
  0x3d   :  { %1610 = vmatprep.subr.bf16.mxu0 %v1737_v8  ;;  %v1744_v15 = vld [vmem:[#allocation5 + $0x98] sm:$0xff]   ;;  %v1748_v19 = vld [vmem:[#allocation5 + $0xa0] sm:$0xff]   ;;  %v1751_v22 = vld [vmem:[#allocation5 + $0xe8] sm:$0xff]  }
  0x3e   :  { %1637 = vmatpush3.bf16.msra.mxu1 %v1736_v7  ;;  %v1752_v23 = vld [vmem:[#allocation5 + $0xa8] sm:$0xff]   ;;  %v1753_v24 = vld [vmem:[#allocation5 + $0x70] sm:$0xff]   ;;  %v1757_v28 = vld [vmem:[#allocation5 + $0x78] sm:$0xff]  }
  0x3f   :  { %1638 = vmatprep.subr.bf16.mxu1 %v1739_v10  ;;  %v1754_v25 = vld [vmem:[#allocation5 + $0x30] sm:$0xff]   ;;  %v1758_v29 = vld [vmem:[#allocation5 + $0x38] sm:$0xff]   ;;  %v1764_v34 = vld [vmem:[#allocation5 + $0x140] sm:$0xff]  }
  0x40   :  { %1611 = vmatpush3.bf16.msra.mxu0 %v1738_v9  ;;  %v1755_v26 = vld [vmem:[#allocation5 + $0xf0] sm:$0xff]   ;;  %v1759_v30 = vld [vmem:[#allocation5 + $0xf8] sm:$0xff]   ;;  %v1768_v37 = vld [vmem:[#allocation5 + $0x100] sm:$0xff]  }
  0x41   :  { %1612 = vmatprep.subr.bf16.mxu0 %v1741_v12  ;;  %v1756_v27 = vld [vmem:[#allocation5 + $0xb0] sm:$0xff]   ;;  %v1763_v33 = vld [vmem:[#allocation5 + $0xb8] sm:$0xff]   ;;  %v1769_v38 = vld [vmem:[#allocation5 + $0x148] sm:$0xff]  }
  0x42   :  { %1639 = vmatpush3.bf16.msra.mxu1 %v1740_v11  ;;  %v1760_v31 = vld [vmem:[#allocation3] ss:$24 sps:$4 sm:$0xff]   ;;  %v1762_v32 = vld [vmem:[#allocation3 + $0x4] ss:$24 sps:$4 sm:$0xff]   ;;  %v1770_v39 = vld [vmem:[#allocation5 + $0x108] sm:$0xff]  }
  0x43   :  { %1640 = vmatprep.subr.bf16.mxu1 %v1743_v14  ;;  %552 = vmatprep.mubr.bf16.mxu0 %v1762_v32  ;;  %v1765_v35 = vld [vmem:[#allocation3 + $0x8] ss:$24 sps:$4 sm:$0xff]   ;;  %v1767_v36 = vld [vmem:[#allocation3 + $0xc] ss:$24 sps:$4 sm:$0xff]   ;;  %v1771_v40 = vld [vmem:[#allocation5 + $0x150] sm:$0xff]  }
  0x44   :  { %1613 = vmatpush3.bf16.msra.mxu0 %v1742_v13  ;;  %600 = vmatprep.mubr.bf16.mxu1 %v1767_v36  ;;  %v1772_v41 = vld [vmem:[#allocation5 + $0x110] sm:$0xff]   ;;  %v1773_v42 = vld [vmem:[#allocation5 + $0x158] sm:$0xff]   ;;  %v75_v43 = vld [vmem:[#allocation3 + $0x30] sm:$0x33] }
  0x45   :  { %1614 = vmatprep.subr.bf16.mxu0 %v1745_v16  ;;  %v1774_v44 = vld [vmem:[#allocation5 + $0x118] sm:$0xff]   ;;  %v1543_v45 = vcombine.high %v75_v43, %v75_v43  ;;  %v1542_v46 = vcombine.low %v75_v43, %v75_v43  ;;  %v1775_v47 = vld [vmem:[#allocation5 + $0x160] sm:$0xff]   ;;  %v76_v48 = vld [vmem:[#allocation3 + $0x38] sm:$0x33] }
  0x46   :  { %1641 = vmatpush3.bf16.msra.mxu1 %v1744_v15  ;;  %v1545_v49 = vcombine.high %v76_v48, %v76_v48  ;;  %v1544_v50 = vcombine.low %v76_v48, %v76_v48  ;;  %v1776_v51 = vld [vmem:[#allocation5 + $0x120] sm:$0xff]   ;;  %v1778_v52 = vld [vmem:[#allocation5 + $0x168] sm:$0xff]   ;;  %v1782_v55 = vld [vmem:[#allocation5 + $0x170] sm:$0xff]  }
  0x47   :  { %1642 = vmatprep.subr.bf16.mxu1 %v1747_v18  ;;  %v1780_v53 = vld [vmem:[#allocation5 + $0x128] sm:$0xff]   ;;  %v1784_v56 = vld [vmem:[#allocation5 + $0x130] sm:$0xff]   ;;  %v1785_v57 = vld [vmem:[#allocation5 + $0x178] sm:$0xff]  }
  0x48   :  { %1615 = vmatpush3.bf16.msra.mxu0 %v1746_v17  ;;  %v1789_v54 = vld [vmem:[#allocation3 + $0x14] ss:$24 sps:$4 sm:$0xff]   ;;  %v1786_v58 = vld [vmem:[#allocation5 + $0x138] sm:$0xff]   ;;  %v1787_v60 = vld [vmem:[#allocation3 + $0x10] ss:$24 sps:$4 sm:$0xff]  }
  0x49   :  { %1616 = vmatprep.subr.bf16.mxu0 %v1749_v20  ;;  %v77_v59 = vld [vmem:[#allocation3 + $0x40] sm:$0x33]  ;;  %v1792_v63 = vld [vmem:[#allocation7] sm:$0xff]   ;;  %v1793_v0 = vld [vmem:[#allocation7 + $0x8] sm:$0xff]  }
  0x4a   :  { %1643 = vmatpush3.bf16.msra.mxu1 %v1748_v19  ;;  %v1547_v61 = vcombine.high %v77_v59, %v77_v59  ;;  %v1546_v62 = vcombine.low %v77_v59, %v77_v59  ;;  %v1794_v1 = vld [vmem:[#allocation7 + $0x10] sm:$0xff]   ;;  %v1795_v2 = vld [vmem:[#allocation7 + $0x18] sm:$0xff]   ;;  %v1796_v3 = vld [vmem:[#allocation7 + $0x20] sm:$0xff]   ;;  %v1925_v59 = vmov 1966171168  }
  0x4b   :  { %1644 = vmatprep.subr.bf16.mxu1 %v1751_v22  ;;  %v1797_v4 = vld [vmem:[#allocation7 + $0x28] sm:$0xff]   ;;  %v1798_v5 = vld [vmem:[#allocation7 + $0x30] sm:$0xff]   ;;  %v1799_v6 = vld [vmem:[#allocation7 + $0x38] sm:$0xff]  }
  0x4c   :  { %1617 = vmatpush3.bf16.msra.mxu0 %v1750_v21  ;;  %v1535_v8 = vld [vmem:[%s2459_s2] ss:$0 sm:$0xff] }
  0x4d   :  { %1618 = vmatprep.subr.bf16.mxu0 %v1753_v24 }
  0x4e   :  { %1645 = vmatpush3.bf16.msra.mxu1 %v1752_v23 }
  0x4f   :  { %1646 = vmatprep.subr.bf16.mxu1 %v1755_v26 }
  0x50   :  { %1619 = vmatpush3.bf16.msra.mxu0 %v1754_v25 }
  0x51   :  { %1620 = vmatprep.subr.bf16.mxu0 %v1757_v28 }
  0x52   :  { %1647 = vmatpush3.bf16.msra.mxu1 %v1756_v27 }
  0x53   :  { %1648 = vmatprep.subr.bf16.mxu1 %v1759_v30 }
  0x54   :  { %1621 = vmatpush3.bf16.msra.mxu0 %v1758_v29 }
  0x55   :  { %1662 = vmatprep.subr.bf16.mxu0 %v1764_v34 }
  0x56   :  { %1649 = vmatpush3.bf16.msra.mxu1 %v1763_v33 }
  0x57   :  { %553 = vmatmul.mubr.bf16.vlgmr.msra.gmra.mrb[0].mxu0 %v1760_v31  ;;  %1700 = vmatprep.subr.bf16.mxu1 %v1792_v63 }
  0x58   :  { %1663 = vmatpush3.bf16.msra.mxu0 %v1768_v37  ;;  %560 = vmatprep.mubr.bf16.mxu0 %v1543_v45 }
  0x59   :  { %601 = vmatmul.mubr.bf16.vlgmr.msra.gmra.mrb[0].mxu1 %v1765_v35  ;;  %1664 = vmatprep.subr.bf16.mxu0 %v1769_v38 }
  0x5a   :  { %608 = vmatprep.mubr.bf16.mxu1 %v1545_v49  ;;  %1701 = vmatpush3.bf16.msra.mxu1 %v1792_v63 }
  0x5b   :  { %1702 = vmatprep.subr.bf16.mxu1 %v1793_v0 }
  0x5c   :  { %1665 = vmatpush3.bf16.msra.mxu0 %v1770_v39 }
  0x5d   :  { %1666 = vmatprep.subr.bf16.mxu0 %v1771_v40 }
  0x5e   :  { %1703 = vmatpush3.bf16.msra.mxu1 %v1793_v0 }
  0x5f   :  { %561 = vmatmul.mubr.bf16.gmra.mrb[4].mxu0 %v1542_v46  ;;  %1704 = vmatprep.subr.bf16.mxu1 %v1794_v1 }
  0x60   :  { %1667 = vmatpush3.bf16.msra.mxu0 %v1772_v41  ;;  %648 = vmatprep.mubr.bf16.mxu0 %v1789_v54 }
  0x61   :  { %1668 = vmatprep.subr.bf16.mxu0 %v1773_v42  ;;  %609 = vmatmul.mubr.bf16.gmra.mrb[4].mxu1 %v1544_v50 }
  0x62   :  { %1705 = vmatpush3.bf16.msra.mxu1 %v1794_v1 }
  0x63   :  { %1706 = vmatprep.subr.bf16.mxu1 %v1795_v2 }
  0x64   :  { %1669 = vmatpush3.bf16.msra.mxu0 %v1774_v44 }
  0x65   :  { %1670 = vmatprep.subr.bf16.mxu0 %v1775_v47 }
  0x66   :  { %1707 = vmatpush3.bf16.msra.mxu1 %v1795_v2 }
  0x67   :  { %1708 = vmatprep.subr.bf16.mxu1 %v1796_v3 }
  0x68   :  { %1671 = vmatpush3.bf16.msra.mxu0 %v1776_v51 }
  0x69   :  { %1672 = vmatprep.subr.bf16.mxu0 %v1778_v52 }
  0x6a   :  { %1709 = vmatpush3.bf16.msra.mxu1 %v1796_v3 }
  0x6b   :  { %1710 = vmatprep.subr.bf16.mxu1 %v1797_v4 }
  0x6c   :  { %1673 = vmatpush3.bf16.msra.mxu0 %v1780_v53 }
  0x6d   :  { %1674 = vmatprep.subr.bf16.mxu0 %v1782_v55  ;;  %v786_v55 = vlaneseq }
  0x6e   :  { %1711 = vmatpush3.bf16.msra.mxu1 %v1797_v4 }
  0x6f   :  { %1712 = vmatprep.subr.bf16.mxu1 %v1798_v5 }
  0x70   :  { %1675 = vmatpush3.bf16.msra.mxu0 %v1784_v56  ;;  %v787_v56 = vshrl.u32 %v786_v55, 7 }
  0x71   :  { %1676 = vmatprep.subr.bf16.mxu0 %v1785_v57  ;;  %v1460_v57 = vand.u32 127, %v786_v55 }
  0x72   :  { %1713 = vmatpush3.bf16.msra.mxu1 %v1798_v5  ;;  %v913_v5 = vsub.s32 0, %v787_v56 }
  0x73   :  { %1714 = vmatprep.subr.bf16.mxu1 %v1799_v6 }
  0x74   :  { %1677 = vmatpush3.bf16.msra.mxu0 %v1786_v58  ;;  %v2012_v58 = vsub.s32 %v1460_v57, %v787_v56 }
  0x76   :  { %1715 = vmatpush3.bf16.msra.mxu1 %v1799_v6 }
  0x77   :  { %649 = vmatmul.mubr.bf16.vlgmr.msra.gmra.mrb[8].mxu0 %v1787_v60  ;;  %v840_v60 = vunpack.c.l.s4 %v1925_v59 }
  0x78   :  { %656 = vmatprep.mubr.bf16.mxu0 %v1547_v61  ;;  %v1926_v61 = vmov 1983009808  }
  0x79   :  { %v841_v63 = vunpack.c.0.s8 %v840_v60 }
  0x7b   :  { %v844_v1 = vsub.s32 %v841_v63, %v787_v56 }
  0x7f   :  { %657 = vmatmul.mubr.bf16.gmra.mrb[12].mxu0 %v1546_v62  ;;  %v784_v62 = vunpack.c.l.s4 %v1926_v61 }
  0x81   :  { %v785_v0 = vunpack.c.0.s8 %v784_v62 }
  0x83   :  { %v788_v2 = vsub.s32 %v785_v0, %v787_v56 }
 0x12a   :  { %v1622_v7 = vpop.f32.mrb[0].mxu0 }
 0x12b   :  { %v1623_v9 = vpop.f32.mrb[1].mxu0 }
 0x12c   :  { %v1624_v10 = vadd.f32 %v1623_v9, %v1622_v7  ;;  %v1625_v11 = vpop.f32.mrb[2].mxu0  ;;  %v1650_v12 = vpop.f32.mrb[0].mxu1 }
 0x12d   :  { %v1626_v13 = vpop.f32.mrb[3].mxu0  ;;  %v1651_v16 = vpop.f32.mrb[1].mxu1 }
 0x12e   :  { %v555_v14 = vadd.f32 %v1624_v10, %v1535_v8  ;;  %v1627_v15 = vadd.f32 %v1626_v13, %v1625_v11  ;;  %v1652_v17 = vadd.f32 %v1651_v16, %v1650_v12  ;;  %v1653_v18 = vpop.f32.mrb[2].mxu1 }
 0x12f   :  { %v1654_v20 = vpop.f32.mrb[3].mxu1 }
 0x130   :  { %v558_v19 = vadd.f32 %v1627_v15, %v1535_v8  ;;  %v603_v21 = vadd.f32 %v1652_v17, %v555_v14  ;;  %v1655_v22 = vadd.f32 %v1654_v20, %v1653_v18 }
 0x132   :  { %v606_v23 = vadd.f32 %v1655_v22, %v558_v19  ;;  %v1628_v24 = vpop.f32.mrb[4].mxu0 }
 0x133   :  { %v1629_v25 = vpop.f32.mrb[5].mxu0 }
 0x134   :  { %v1630_v26 = vadd.f32 %v1629_v25, %v1628_v24  ;;  %v1631_v27 = vpop.f32.mrb[6].mxu0  ;;  %v1656_v29 = vpop.f32.mrb[4].mxu1 }
 0x135   :  { %v1632_v28 = vpop.f32.mrb[7].mxu0  ;;  %v1657_v31 = vpop.f32.mrb[5].mxu1 }
 0x136   :  { %v563_v30 = vadd.f32 %v1630_v26, %v1535_v8  ;;  %v1658_v32 = vadd.f32 %v1657_v31, %v1656_v29  ;;  %v1659_v33 = vpop.f32.mrb[6].mxu1 }
 0x137   :  { %v1660_v34 = vpop.f32.mrb[7].mxu1 }
 0x138   :  { %v611_v35 = vadd.f32 %v1658_v32, %v563_v30 }
 0x14a   :  { %v1678_v36 = vpop.f32.mrb[8].mxu0 }
 0x14b   :  { %v1679_v37 = vpop.f32.mrb[9].mxu0 }
 0x14c   :  { %v1680_v38 = vadd.f32 %v1679_v37, %v1678_v36  ;;  %v1681_v39 = vpop.f32.mrb[10].mxu0 }
 0x14d   :  { %v1682_v40 = vpop.f32.mrb[11].mxu0 }
 0x14e   :  { %v651_v41 = vadd.f32 %v1680_v38, %v603_v21  ;;  %v1683_v42 = vadd.f32 %v1682_v40, %v1681_v39 }
 0x150   :  { %v654_v43 = vadd.f32 %v1683_v42, %v606_v23  ;;  %v664_v44 = vmax.f32 %v651_v41, 0.0 }
 0x152   :  { %v665_v45 = vmax.f32 %v654_v43, 0.0  ;;  %v1684_v46 = vpop.f32.mrb[12].mxu0 }
 0x153   :  { %v1685_v47 = vpop.f32.mrb[13].mxu0 }
 0x154   :  { %v1686_v48 = vadd.f32 %v1685_v47, %v1684_v46  ;;  %v1687_v49 = vpop.f32.mrb[14].mxu0  ;;  %v667_v50 = vpack.c.bf16 %v665_v45, %v664_v44 }
 0x155   :  { %v1688_v51 = vpop.f32.mrb[15].mxu0 }
 0x156   :  { %v659_v52 = vadd.f32 %v1686_v48, %v611_v35  ;;  %1716 = vmatprep.mubr.bf16.mxu1 %v667_v50 }
 0x158   :  { %v666_v53 = vmax.f32 %v659_v52, 0.0 }
 0x15a   :  { %v668_v54 = vpack.c.bf16 %v666_v53, %v666_v53 }
 0x15c   :  { %1717 = vmatmul.mubr.bf16.vlgmr.msra.gmra.mrb[8].mxu1 %v668_v54 }
 0x22f   :  { %v1718_v3 = vpop.f32.mrb[8].mxu1 }
 0x230   :  { %v893_v4 = vrot.slane %v1718_v3, %v844_v1  ;;  %v767_v6 = vpop.f32.mrb[9].mxu1 }
 0x231   :  { %v782_v7 = vcombine.high %v767_v6, %v767_v6  ;;  %v789_v8 = vrot.slane %v767_v6, %v788_v2  ;;  %v1719_v9 = vpop.f32.mrb[10].mxu1 }
 0x232   :  { %v894_v10 = vcombine.high %v893_v4, %v893_v4  ;;  %v770_v11 = vpop.f32.mrb[11].mxu1  ;;  %v901_v12 = vrot.slane %v893_v4, %v844_v1 }
 0x233   :  { %v796_v13 = vrot.slane %v782_v7, %v788_v2  ;;  %v845_v14 = vrot.slane %v770_v11, %v844_v1  ;;  %v838_v17 = vcombine.high %v770_v11, %v770_v11  ;;  %v797_v42 = vcombine.high %v789_v8, %v789_v8 }
 0x234   :  { %v946_v15 = vrot.slane %v901_v12, %v913_v5  ;;  %v908_v16 = vrot.slane %v894_v10, %v844_v1  ;;  %v909_v23 = vcombine.high %v901_v12, %v901_v12  ;;  %v804_v44 = vsel %vm803_vm0, %v789_v8, 0.0 }
 0x235   :  { %v853_v18 = vcombine.high %v845_v14, %v845_v14  ;;  %v861_v19 = vrot.slane %v845_v14, %v844_v1  ;;  %v852_v21 = vrot.slane %v838_v17, %v844_v1  ;;  %v798_v43 = vcombine.high %v796_v13, %v796_v13 }
 0x236   :  { %975 = vrot.lane.b32.xlu0 %v946_v15, %s1919_s11  ;;  %v950_v20 = vrot.slane %v908_v16, %v913_v5  ;;  %v954_v25 = vrot.slane %v909_v23, %v913_v5  ;;  %v910_v39 = vcombine.high %v908_v16, %v908_v16  ;;  %v811_v45 = vsel %vm803_vm0, %v797_v42, 0.0 }
 0x237   :  { %v914_v22 = vrot.slane %v861_v19, %v913_v5  ;;  %v875_v24 = vrot.slane %v853_v18, %v844_v1  ;;  %v883_v26 = vcombine.high %v861_v19, %v861_v19  ;;  %v854_v27 = vcombine.high %v852_v21, %v852_v21 }
 0x238   :  { %977 = vrot.lane.b32.xlu1 %v950_v20, %s1919_s11  ;;  %v868_v29 = vrot.slane %v852_v21, %v844_v1  ;;  %v958_v41 = vrot.slane %v910_v39, %v913_v5  ;;  %v818_v46 = vsel %vm803_vm0, %v796_v13, 0.0  ;;  %v825_v47 = vsel %vm803_vm0, %v798_v43, 0.0  ;;  %v2037_v13 = vld [vmem:[%s2461_s4] ss:$0 sm:$0xff] }
 0x239   :  { %v918_v28 = vrot.slane %v875_v24, %v913_v5  ;;  %v922_v30 = vrot.slane %v883_v26, %v913_v5  ;;  %v885_v31 = vcombine.high %v875_v24, %v875_v24  ;;  %v882_v34 = vrot.slane %v854_v27, %v844_v1  ;;  %v2054_v24 = vld [vmem:[%s2462_s5] ss:$0 sm:$0xff] }
 0x23a   :  { %959 = vrot.lane.b32.xlu0 %v914_v22, %s1919_s11  ;;  %v930_v32 = vrot.slane %v868_v29, %v913_v5  ;;  %v884_v33 = vcombine.high %v868_v29, %v868_v29  ;;  %v805_v48 = vrot.slane %v804_v44, 4  ;;  %v812_v49 = vrot.slane %v811_v45, 4 }
 0x23b   :  { %v926_v35 = vrot.slane %v885_v31, %v913_v5  ;;  %v886_v37 = vcombine.high %v882_v34, %v882_v34  ;;  %v934_v38 = vrot.slane %v882_v34, %v913_v5  ;;  %v819_v50 = vrot.slane %v818_v46, 4 }
 0x23c   :  { %979 = vrot.lane.b32.xlu1 %v954_v25, %s1919_s11  ;;  %v938_v36 = vrot.slane %v884_v33, %v913_v5  ;;  %v826_v51 = vrot.slane %v825_v47, 4  ;;  %v806_v52 = vadd.f32 %v805_v48, %v804_v44  ;;  %v813_v53 = vadd.f32 %v812_v49, %v811_v45 }
 0x23d   :  { %v942_v40 = vrot.slane %v886_v37, %v913_v5  ;;  %v820_v54 = vadd.f32 %v819_v50, %v818_v46 }
 0x23e   :  { %961 = vrot.lane.b32.xlu0 %v918_v28, %s1919_s11  ;;  %v827_v55 = vadd.f32 %v826_v51, %v825_v47  ;;  %v807_v56 = vrot.slane %v806_v52, 2  ;;  %v814_v57 = vrot.slane %v813_v53, 2 }
 0x23f   :  { %v821_v59 = vrot.slane %v820_v54, 2 }
 0x240   :  { %963 = vrot.lane.b32.xlu1 %v922_v30, %s1919_s11  ;;  %v828_v60 = vrot.slane %v827_v55, 2  ;;  %v808_v61 = vadd.f32 %v807_v56, %v806_v52  ;;  %v815_v62 = vadd.f32 %v814_v57, %v813_v53 }
 0x241   :  { %v822_v63 = vadd.f32 %v821_v59, %v820_v54 }
 0x242   :  { %967 = vrot.lane.b32.xlu0 %v930_v32, %s1919_s11  ;;  %v829_v0 = vadd.f32 %v828_v60, %v827_v55  ;;  %v809_v1 = vrot.slane %v808_v61, 1  ;;  %v816_v2 = vrot.slane %v815_v62, 1 }
 0x243   :  { %v823_v3 = vrot.slane %v822_v63, 1 }
 0x244   :  { %965 = vrot.lane.b32.xlu1 %v926_v35, %s1919_s11  ;;  %v830_v4 = vrot.slane %v829_v0, 1  ;;  %v810_v5 = vadd.f32 %v809_v1, %v808_v61  ;;  %v817_v6 = vadd.f32 %v816_v2, %v815_v62 }
 0x245   :  { %v824_v7 = vadd.f32 %v823_v3, %v822_v63 }
 0x246   :  { %971 = vrot.lane.b32.xlu0 %v938_v36, %s1919_s11  ;;  %v831_v8 = vadd.f32 %v830_v4, %v829_v0  ;;  %v2026_v9 = vmul.f32 0.5, %v810_v5  ;;  %v2028_v10 = vmul.f32 0.5, %v817_v6 }
 0x247   :  { %v2030_v11 = vmul.f32 0.5, %v824_v7 }
 0x248   :  { %969 = vrot.lane.b32.xlu1 %v934_v38, %s1919_s11  ;;  %v2032_v12 = vmul.f32 0.5, %v831_v8 }
 0x24a   :  { %973 = vrot.lane.b32.xlu0 %v942_v40, %s1919_s11 }
 0x24c   :  { %981 = vrot.lane.b32.xlu1 %v958_v41, %s1919_s11 }
 0x2a8   :  { %v976_v14 = vpop.permute.xlu0 %975 }
 0x2a9   :  { %v1027_v15 = vadd.f32 %v976_v14, %v2026_v9  ;;  %v1028_v16 = vadd.f32 %v976_v14, %v2028_v10  ;;  %v1029_v17 = vadd.f32 %v976_v14, %v2030_v11  ;;  %v1030_v18 = vadd.f32 %v976_v14, %v2032_v12 }
 0x2aa   :  { %v978_v23 = vpop.permute.xlu1 %977 }
 0x2ab   :  { %v1082_v19 = vadd.f32 %v2037_v13, %v1027_v15  ;;  %v1083_v20 = vadd.f32 %v2037_v13, %v1028_v16  ;;  %v2046_v21 = vadd.f32 %v2037_v13, %v1029_v17  ;;  %v2049_v22 = vadd.f32 %v2037_v13, %v1030_v18 }
 0x2ac   :  { %v1031_v25 = vadd.f32 %v978_v23, %v2026_v9  ;;  %v1032_v26 = vadd.f32 %v978_v23, %v2028_v10  ;;  %v1033_v27 = vadd.f32 %v978_v23, %v2030_v11  ;;  %v1034_v28 = vadd.f32 %v978_v23, %v2032_v12  ;;  %v960_v32 = vpop.permute.xlu0 %959 }
 0x2ad   :  { %v1130_v29 = vmax.f32 %v1082_v19, 0.0  ;;  %v1131_v30 = vmax.f32 %v1083_v20, 0.0  ;;  %v1132_v31 = vmax.f32 %v2046_v21, 0.0  ;;  %v1133_v37 = vmax.f32 %v2049_v22, 0.0 }
 0x2ae   :  { %v1086_v33 = vadd.f32 %v2037_v13, %v1031_v25  ;;  %v1087_v34 = vadd.f32 %v2037_v13, %v1032_v26  ;;  %v2064_v35 = vadd.f32 %v2037_v13, %v1033_v27  ;;  %v2067_v36 = vadd.f32 %v2037_v13, %v1034_v28  ;;  %v980_v41 = vpop.permute.xlu1 %979 }
 0x2af   :  { %v2071_v38 = vmul.f32 %v2054_v24, %v1130_v29  ;;  %v995_v39 = vadd.f32 %v960_v32, %v2026_v9  ;;  %v996_v40 = vadd.f32 %v960_v32, %v2028_v10  ;;  %v2076_v42 = vmul.f32 %v2054_v24, %v1131_v30 }
 0x2b0   :  { %v1134_v43 = vmax.f32 %v1086_v33, 0.0  ;;  %v1135_v44 = vmax.f32 %v1087_v34, 0.0  ;;  %v1136_v45 = vmax.f32 %v2064_v35, 0.0  ;;  %v997_v46 = vadd.f32 %v960_v32, %v2030_v11  ;;  %v962_v63 = vpop.permute.xlu0 %961 }
 0x2b1   :  { %v998_v47 = vadd.f32 %v960_v32, %v2032_v12  ;;  %v1050_v48 = vadd.f32 %v2037_v13, %v995_v39  ;;  %v1051_v49 = vadd.f32 %v2037_v13, %v996_v40  ;;  %v1137_v50 = vmax.f32 %v2067_v36, 0.0 }
 0x2b2   :  { %v2085_v51 = vmul.f32 %v2054_v24, %v1134_v43  ;;  %v1035_v52 = vadd.f32 %v980_v41, %v2026_v9  ;;  %v1036_v53 = vadd.f32 %v980_v41, %v2028_v10  ;;  %v2090_v54 = vadd.f32 %v2037_v13, %v997_v46  ;;  %v964_v17 = vpop.permute.xlu1 %963 }
 0x2b3   :  { %v2093_v55 = vadd.f32 %v2037_v13, %v998_v47  ;;  %v1098_v56 = vmax.f32 %v1050_v48, 0.0  ;;  %v1099_v57 = vmax.f32 %v1051_v49, 0.0  ;;  %v1037_v59 = vadd.f32 %v980_v41, %v2030_v11 }
 0x2b4   :  { %v1038_v60 = vadd.f32 %v980_v41, %v2032_v12  ;;  %v1090_v61 = vadd.f32 %v2037_v13, %v1035_v52  ;;  %v1091_v62 = vadd.f32 %v2037_v13, %v1036_v53  ;;  %v2100_v0 = vmul.f32 %v2054_v24, %v1135_v44  ;;  %v968_v34 = vpop.permute.xlu0 %967 }
 0x2b5   :  { %v1100_v1 = vmax.f32 %v2090_v54, 0.0  ;;  %v1101_v2 = vmax.f32 %v2093_v55, 0.0  ;;  %v2105_v3 = vmul.f32 %v2054_v24, %v1098_v56  ;;  %v2108_v4 = vadd.f32 %v2037_v13, %v1037_v59 }
 0x2b6   :  { %v2111_v5 = vadd.f32 %v2037_v13, %v1038_v60  ;;  %v1138_v6 = vmax.f32 %v1090_v61, 0.0  ;;  %v1139_v7 = vmax.f32 %v1091_v62, 0.0  ;;  %v999_v8 = vadd.f32 %v962_v63, %v2026_v9 }
 0x2b7   :  { %v1000_v14 = vadd.f32 %v962_v63, %v2028_v10  ;;  %v1001_v15 = vadd.f32 %v962_v63, %v2030_v11  ;;  %v1002_v16 = vadd.f32 %v962_v63, %v2032_v12  ;;  %v2118_v18 = vmul.f32 %v2054_v24, %v1099_v57  ;;  %v966_v57 = vpop.permute.xlu1 %965 }
 0x2b8   :  { %v1140_v19 = vmax.f32 %v2108_v4, 0.0  ;;  %v1141_v20 = vmax.f32 %v2111_v5, 0.0  ;;  %v2123_v23 = vmul.f32 %v2054_v24, %v1138_v6  ;;  %v1054_v25 = vadd.f32 %v2037_v13, %v999_v8 }
 0x2b9   :  { %v1055_v26 = vadd.f32 %v2037_v13, %v1000_v14  ;;  %v2128_v27 = vadd.f32 %v2037_v13, %v1001_v15  ;;  %v2131_v28 = vadd.f32 %v2037_v13, %v1002_v16  ;;  %v1003_v29 = vadd.f32 %v964_v17, %v2026_v9 }
 0x2ba   :  { %v1004_v30 = vadd.f32 %v964_v17, %v2028_v10  ;;  %v1005_v32 = vadd.f32 %v964_v17, %v2030_v11  ;;  %v1006_v33 = vadd.f32 %v964_v17, %v2032_v12  ;;  %v2138_v39 = vmul.f32 %v2054_v24, %v1139_v7 }
 0x2bb   :  { %v1102_v40 = vmax.f32 %v1054_v25, 0.0  ;;  %v1103_v41 = vmax.f32 %v1055_v26, 0.0  ;;  %v1104_v43 = vmax.f32 %v2128_v27, 0.0  ;;  %v1058_v44 = vadd.f32 %v2037_v13, %v1003_v29 }
 0x2bc   :  { %v1059_v46 = vadd.f32 %v2037_v13, %v1004_v30  ;;  %v2144_v47 = vadd.f32 %v2037_v13, %v1005_v32  ;;  %v2147_v48 = vadd.f32 %v2037_v13, %v1006_v33  ;;  %v1105_v49 = vmax.f32 %v2131_v28, 0.0 }
 0x2bd   :  { %v2151_v52 = vmul.f32 %v2054_v24, %v1102_v40  ;;  %v1011_v53 = vadd.f32 %v968_v34, %v2026_v9  ;;  %v1012_v56 = vadd.f32 %v968_v34, %v2028_v10  ;;  %v2156_v59 = vmul.f32 %v2054_v24, %v1103_v41  ;;  %v972_v41 = vpop.permute.xlu0 %971 }
 0x2be   :  { %v1106_v60 = vmax.f32 %v1058_v44, 0.0  ;;  %v1107_v61 = vmax.f32 %v1059_v46, 0.0  ;;  %v1108_v62 = vmax.f32 %v2144_v47, 0.0  ;;  %v1013_v63 = vadd.f32 %v968_v34, %v2030_v11 }
 0x2bf   :  { %v1014_v6 = vadd.f32 %v968_v34, %v2032_v12  ;;  %v1066_v7 = vadd.f32 %v2037_v13, %v1011_v53  ;;  %v1067_v8 = vadd.f32 %v2037_v13, %v1012_v56  ;;  %v1109_v14 = vmax.f32 %v2147_v48, 0.0 }
 0x2c0   :  { %v2165_v15 = vmul.f32 %v2054_v24, %v1106_v60  ;;  %v1007_v16 = vadd.f32 %v966_v57, %v2026_v9  ;;  %v1008_v17 = vadd.f32 %v966_v57, %v2028_v10  ;;  %v2170_v25 = vadd.f32 %v2037_v13, %v1013_v63 }
 0x2c1   :  { %v2173_v26 = vadd.f32 %v2037_v13, %v1014_v6  ;;  %v1114_v29 = vmax.f32 %v1066_v7, 0.0  ;;  %v1115_v30 = vmax.f32 %v1067_v8, 0.0  ;;  %v1009_v32 = vadd.f32 %v966_v57, %v2030_v11 }
 0x2c2   :  { %v1010_v33 = vadd.f32 %v966_v57, %v2032_v12  ;;  %v1062_v34 = vadd.f32 %v2037_v13, %v1007_v16  ;;  %v1063_v40 = vadd.f32 %v2037_v13, %v1008_v17  ;;  %v2180_v44 = vmul.f32 %v2054_v24, %v1107_v61 }
 0x2c3   :  { %v1116_v46 = vmax.f32 %v2170_v25, 0.0  ;;  %v1117_v53 = vmax.f32 %v2173_v26, 0.0  ;;  %v2185_v56 = vmul.f32 %v2054_v24, %v1114_v29  ;;  %v2188_v60 = vmul.f32 %v2054_v24, %v1115_v30 }
 0x2c4   :  { %v2191_v57 = vadd.f32 %v2037_v13, %v1009_v32  ;;  %v2194_v63 = vadd.f32 %v2037_v13, %v1010_v33  ;;  %v1110_v6 = vmax.f32 %v1062_v34, 0.0  ;;  %v1187_v61 = vmul.f32 %v2054_v24, %v1132_v31 }
 0x2c5   :  { %v1188_v7 = vmul.f32 %v2054_v24, %v1133_v37  ;;  %v1300_v8 = vrot.slane %v2076_v42, 7  ;;  %v1019_v16 = vadd.f32 %v972_v41, %v2026_v9  ;;  %v1111_v17 = vmax.f32 %v1063_v40, 0.0 }
 0x2c6   :  { %v2207_v32 = vmul.f32 %v2054_v24, %v1110_v6  ;;  %v1302_v31 = vrot.slane %v1187_v61, 6  ;;  %v1020_v22 = vadd.f32 %v972_v41, %v2028_v10  ;;  %v1021_v37 = vadd.f32 %v972_v41, %v2030_v11 }
 0x2c7   :  { %v1301_v21 = vsel %vm1250_vm1, %v1300_v8, %v2071_v38  ;;  %v1304_v33 = vrot.slane %v1188_v7, 5  ;;  %v1022_v42 = vadd.f32 %v972_v41, %v2032_v12  ;;  %v1074_v34 = vadd.f32 %v2037_v13, %v1019_v16 }
 0x2c8   :  { %v1191_v40 = vmul.f32 %v2054_v24, %v1136_v45  ;;  %v1303_v6 = vsel %vm1253_vm2, %v1302_v31, %v1301_v21  ;;  %v1075_v30 = vadd.f32 %v2037_v13, %v1020_v22  ;;  %v1192_v38 = vmul.f32 %v2054_v24, %v1137_v50  ;;  %v970_v45 = vpop.permute.xlu1 %969 }
 0x2c9   :  { %v1306_v61 = vrot.slane %v2100_v0, 7  ;;  %v1305_v7 = vsel %vm1256_vm3, %v1304_v33, %v1303_v6  ;;  %v2226_v41 = vadd.f32 %v2037_v13, %v1021_v37  ;;  %v2229_v8 = vadd.f32 %v2037_v13, %v1022_v42  ;;  %v974_v0 = vpop.permute.xlu0 %973 }
 0x2ca   :  { %v1122_v35 = vmax.f32 %v1074_v34, 0.0  ;;  %v2232_v16 = vmul.f32 %v2054_v24, %v1111_v17  ;;  %v1361_v21 = vsel %vm1336_vm4, %v1305_v7, 0.0  ;;  %v1308_v50 = vrot.slane %v1191_v40, 6 }
 0x2cb   :  { %v1307_v36 = vsel %vm1250_vm1, %v1306_v61, %v2085_v51  ;;  %1362 = vadd.xlane.f32.xlu1 %v1361_v21  ;;  %v1123_v31 = vmax.f32 %v1075_v30, 0.0  ;;  %v1124_v33 = vmax.f32 %v2226_v41, 0.0  ;;  %v1310_v37 = vrot.slane %v1192_v38, 5 }
 0x2cc   :  { %v2240_v42 = vmul.f32 %v2054_v24, %v1122_v35  ;;  %v1309_v17 = vsel %vm1253_vm2, %v1308_v50, %v1307_v36  ;;  %v1015_v34 = vadd.f32 %v970_v45, %v2026_v9  ;;  %v1016_v6 = vadd.f32 %v970_v45, %v2028_v10  ;;  %v982_v22 = vpop.permute.xlu1 %981 }
 0x2cd   :  { %v1311_v51 = vsel %vm1256_vm3, %v1310_v37, %v1309_v17  ;;  %v1017_v40 = vadd.f32 %v970_v45, %v2030_v11  ;;  %v1018_v30 = vadd.f32 %v970_v45, %v2032_v12  ;;  %v1023_v61 = vadd.f32 %v974_v0, %v2026_v9 }
 0x2ce   :  { %v1364_v7 = vsel %vm1336_vm4, %v1311_v51, 0.0  ;;  %v1070_v38 = vadd.f32 %v2037_v13, %v1015_v34  ;;  %v1071_v35 = vadd.f32 %v2037_v13, %v1016_v6  ;;  %v1024_v21 = vadd.f32 %v974_v0, %v2028_v10 }
 0x2cf   :  { %1365 = vadd.xlane.f32.xlu0 %v1364_v7  ;;  %v2254_v36 = vadd.f32 %v2037_v13, %v1017_v40  ;;  %v2257_v50 = vadd.f32 %v2037_v13, %v1018_v30  ;;  %v1025_v37 = vadd.f32 %v974_v0, %v2030_v11  ;;  %v1026_v45 = vadd.f32 %v974_v0, %v2032_v12 }
 0x2d0   :  { %v1118_v17 = vmax.f32 %v1070_v38, 0.0  ;;  %v1119_v29 = vmax.f32 %v1071_v35, 0.0  ;;  %v1078_v51 = vadd.f32 %v2037_v13, %v1023_v61  ;;  %v1079_v34 = vadd.f32 %v2037_v13, %v1024_v21 }
 0x2d1   :  { %v2264_v6 = vmul.f32 %v2054_v24, %v1123_v31  ;;  %v2268_v40 = vadd.f32 %v2037_v13, %v1025_v37  ;;  %v2271_v30 = vadd.f32 %v2037_v13, %v1026_v45  ;;  %v1195_v37 = vmul.f32 %v2054_v24, %v1140_v19 }
 0x2d2   :  { %v2275_v38 = vmul.f32 %v2054_v24, %v1118_v17  ;;  %v2278_v61 = vmul.f32 %v2054_v24, %v1119_v29  ;;  %v1126_v35 = vmax.f32 %v1078_v51, 0.0  ;;  %v1127_v31 = vmax.f32 %v1079_v34, 0.0 }
 0x2d3   :  { %v1196_v45 = vmul.f32 %v2054_v24, %v1141_v20  ;;  %v1129_v0 = vmax.f32 %v2271_v30, 0.0  ;;  %v1312_v29 = vrot.slane %v2138_v39, 7  ;;  %v1039_v51 = vadd.f32 %v982_v22, %v2026_v9 }
 0x2d4   :  { %v2289_v17 = vmul.f32 %v2054_v24, %v1126_v35  ;;  %v1314_v34 = vrot.slane %v1195_v37, 6  ;;  %v1040_v21 = vadd.f32 %v982_v22, %v2028_v10  ;;  %v1041_v4 = vadd.f32 %v982_v22, %v2030_v11 }
 0x2d5   :  { %v1316_v7 = vrot.slane %v1196_v45, 5  ;;  %v1313_v5 = vsel %vm1250_vm1, %v1312_v29, %v2123_v23  ;;  %v1042_v19 = vadd.f32 %v982_v22, %v2032_v12  ;;  %v2299_v20 = vadd.f32 %v2037_v13, %v1039_v51 }
 0x2d6   :  { %v1159_v39 = vmul.f32 %v2054_v24, %v1104_v43  ;;  %v1315_v9 = vsel %vm1253_vm2, %v1314_v34, %v1313_v5  ;;  %v1095_v35 = vadd.f32 %v2037_v13, %v1040_v21  ;;  %v2307_v10 = vadd.f32 %v2037_v13, %v1041_v4 }
 0x2d7   :  { %v1160_v11 = vmul.f32 %v2054_v24, %v1105_v49  ;;  %v2313_v12 = vmul.f32 %v2054_v24, %v1127_v31  ;;  %v1317_v23 = vsel %vm1256_vm3, %v1316_v7, %v1315_v9  ;;  %v2317_v27 = vadd.f32 %v2037_v13, %v1042_v19 }
 0x2d8   :  { %v1258_v43 = vrot.slane %v2156_v59, 7  ;;  %v1367_v22 = vsel %vm1336_vm4, %v1317_v23, 0.0  ;;  %v1142_v21 = vmax.f32 %v2299_v20, 0.0  ;;  %v1143_v37 = vmax.f32 %v1095_v35, 0.0 }
 0x2d9   :  { %v1260_v45 = vrot.slane %v1159_v39, 6  ;;  %1368 = vadd.xlane.f32.xlu0 %v1367_v22  ;;  %v1144_v28 = vmax.f32 %v2307_v10, 0.0  ;;  %v1145_v49 = vmax.f32 %v2317_v27, 0.0  ;;  %v1262_v7 = vrot.slane %v1160_v11, 5 }
 0x2da   :  { %v1259_v31 = vsel %vm1250_vm1, %v1258_v43, %v2151_v52  ;;  %v2327_v13 = vmul.f32 %v2054_v24, %v1143_v37  ;;  %v1155_v29 = vmul.f32 %v2054_v24, %v1100_v1  ;;  %v1156_v51 = vmul.f32 %v2054_v24, %v1101_v2 }
 0x2db   :  { %v1261_v59 = vsel %vm1253_vm2, %v1260_v45, %v1259_v31  ;;  %v1249_v4 = vrot.slane %v2118_v18, 7  ;;  %v1171_v52 = vmul.f32 %v2054_v24, %v1116_v46  ;;  %v1172_v5 = vmul.f32 %v2054_v24, %v1117_v53 }
 0x2dc   :  { %v1263_v34 = vsel %vm1256_vm3, %v1262_v7, %v1261_v59  ;;  %v1252_v19 = vrot.slane %v1155_v29, 6  ;;  %v1255_v1 = vrot.slane %v1156_v51, 5  ;;  %v1276_v55 = vrot.slane %v2188_v60, 7 }
 0x2dd   :  { %v1340_v54 = vsel %vm1336_vm4, %v1263_v34, 0.0  ;;  %v1251_v2 = vsel %vm1250_vm1, %v1249_v4, %v2105_v3  ;;  %v1278_v39 = vrot.slane %v1171_v52, 6  ;;  %v1280_v18 = vrot.slane %v1172_v5, 5 }
 0x2de   :  { %1341 = vadd.xlane.f32.xlu1 %v1340_v54  ;;  %v1163_v25 = vmul.f32 %v2054_v24, %v1108_v62  ;;  %v1254_v26 = vsel %vm1253_vm2, %v1252_v19, %v1251_v2  ;;  %v1277_v46 = vsel %vm1250_vm1, %v1276_v55, %v2185_v56  ;;  %v1164_v53 = vmul.f32 %v2054_v24, %v1109_v14 }
 0x2df   :  { %v1264_v60 = vrot.slane %v2180_v44, 7  ;;  %v1257_v9 = vsel %vm1256_vm3, %v1255_v1, %v1254_v26  ;;  %v1279_v3 = vsel %vm1253_vm2, %v1278_v39, %v1277_v46  ;;  %v1179_v47 = vmul.f32 %v2054_v24, %v1124_v33 }
 0x2e0   :  { %v1266_v35 = vrot.slane %v1163_v25, 6  ;;  %v1337_v62 = vsel %vm1336_vm4, %v1257_v9, 0.0  ;;  %v1281_v11 = vsel %vm1256_vm3, %v1280_v18, %v1279_v3  ;;  %v1268_v56 = vrot.slane %v1164_v53, 5 }
 0x2e1   :  { %v1265_v48 = vsel %vm1250_vm1, %v1264_v60, %v2165_v15  ;;  %1338 = vadd.xlane.f32.xlu0 %v1337_v62  ;;  %v1349_v14 = vsel %vm1336_vm4, %v1281_v11, 0.0  ;;  %v2465_v23 = vmax.f32 %v2229_v8, 0.0  ;;  %v1288_v41 = vrot.slane %v2264_v6, 7 }
 0x2e2   :  { %v1267_v44 = vsel %vm1253_vm2, %v1266_v35, %v1265_v48  ;;  %1350 = vadd.xlane.f32.xlu1 %v1349_v14  ;;  %v1290_v22 = vrot.slane %v1179_v47, 6  ;;  %v2466_v37 = vmax.f32 %v2191_v57, 0.0  ;;  %v2467_v45 = vmax.f32 %v2194_v63, 0.0 }
 0x2e3   :  { %v1180_v43 = vmul.f32 %v2054_v24, %v2465_v23  ;;  %v1269_v33 = vsel %vm1256_vm3, %v1268_v56, %v1267_v44  ;;  %v1289_v8 = vsel %vm1250_vm1, %v1288_v41, %v2240_v42  ;;  %v1270_v6 = vrot.slane %v2232_v16, 7 }
 0x2e4   :  { %v1167_v15 = vmul.f32 %v2054_v24, %v2466_v37  ;;  %v1168_v31 = vmul.f32 %v2054_v24, %v2467_v45  ;;  %v1343_v7 = vsel %vm1336_vm4, %v1269_v33, 0.0  ;;  %v1291_v29 = vsel %vm1253_vm2, %v1290_v22, %v1289_v8 }
 0x2e5   :  { %v1292_v59 = vrot.slane %v1180_v43, 5  ;;  %v2468_v57 = vmax.f32 %v2268_v40, 0.0  ;;  %1344 = vadd.xlane.f32.xlu0 %v1343_v7  ;;  %v1271_v52 = vsel %vm1250_vm1, %v1270_v6, %v2207_v32  ;;  %v1184_v42 = vmul.f32 %v2054_v24, %v1129_v0 }
 0x2e6   :  { %v1272_v51 = vrot.slane %v1167_v15, 6  ;;  %v1274_v34 = vrot.slane %v1168_v31, 5  ;;  %v1294_v16 = vrot.slane %v2313_v12, 7  ;;  %v2469_v40 = vmax.f32 %v2254_v36, 0.0 }
 0x2e7   :  { %v1183_v4 = vmul.f32 %v2054_v24, %v2468_v57  ;;  %v1293_v63 = vsel %vm1256_vm3, %v1292_v59, %v1291_v29  ;;  %v1298_v30 = vrot.slane %v1184_v42, 5  ;;  %v2470_v0 = vmax.f32 %v2257_v50, 0.0 }
 0x2e8   :  { %v1355_v5 = vsel %vm1336_vm4, %v1293_v63, 0.0  ;;  %v1273_v54 = vsel %vm1253_vm2, %v1272_v51, %v1271_v52  ;;  %v1175_v1 = vmul.f32 %v2054_v24, %v2469_v40  ;;  %v1295_v32 = vsel %vm1250_vm1, %v1294_v16, %v2289_v17 }
 0x2e9   :  { %v1296_v19 = vrot.slane %v1183_v4, 6  ;;  %1356 = vadd.xlane.f32.xlu1 %v1355_v5  ;;  %v1275_v55 = vsel %vm1256_vm3, %v1274_v34, %v1273_v54  ;;  %v1176_v12 = vmul.f32 %v2054_v24, %v2470_v0  ;;  %v1282_v18 = vrot.slane %v2278_v61, 7 }
 0x2ea   :  { %v1346_v2 = vsel %vm1336_vm4, %v1275_v55, 0.0  ;;  %v1284_v36 = vrot.slane %v1175_v1, 6  ;;  %v1197_v25 = vmul.f32 %v2054_v24, %v1142_v21  ;;  %v1199_v50 = vmul.f32 %v2054_v24, %v1144_v28 }
 0x2eb   :  { %v1297_v39 = vsel %vm1253_vm2, %v1296_v19, %v1295_v32  ;;  %1347 = vadd.xlane.f32.xlu0 %v1346_v2  ;;  %v1200_v17 = vmul.f32 %v2054_v24, %v1145_v49  ;;  %v1283_v61 = vsel %vm1250_vm1, %v1282_v18, %v2275_v38  ;;  %v1286_v53 = vrot.slane %v1176_v12, 5 }
 0x2ec   :  { %v1299_v26 = vsel %vm1256_vm3, %v1298_v30, %v1297_v39  ;;  %v1318_v20 = vrot.slane %v2327_v13, 7  ;;  %v1285_v21 = vsel %vm1253_vm2, %v1284_v36, %v1283_v61  ;;  %v1320_v60 = vrot.slane %v1199_v50, 6 }
 0x2ed   :  { %v1358_v46 = vsel %vm1336_vm4, %v1299_v26, 0.0  ;;  %v1287_v10 = vsel %vm1256_vm3, %v1286_v53, %v1285_v21  ;;  %v1322_v9 = vrot.slane %v1200_v17, 5  ;;  %v1374_v35 = vstv %s2463_s6 }
 0x2ee   :  { %1359 = vadd.xlane.f32.xlu1 %v1358_v46  ;;  %v1319_v28 = vsel %vm1250_vm1, %v1318_v20, %v1197_v25  ;;  %v1352_v27 = vsel %vm1336_vm4, %v1287_v10, 0.0 }
 0x2ef   :  { %v1321_v24 = vsel %vm1253_vm2, %v1320_v60, %v1319_v28  ;;  %1353 = vadd.xlane.f32.xlu0 %v1352_v27 }
 0x2f0   :  { %v1323_v49 = vsel %vm1256_vm3, %v1322_v9, %v1321_v24 }
 0x2f1   :  { %v1370_v38 = vsel %vm1336_vm4, %v1323_v49, 0.0 }
 0x2f3   :  { %1371 = vadd.xlane.f32.xlu0 %v1370_v38 }
 0x358   :  { %v1363_v3 = vpop.xlane.xlu1 %1362 }
 0x359   :  { %v1383_v62 = vadd.f32 %v1374_v35, %v1363_v3 }
 0x35b   :  { %v1395_v56 = vsub.f32 0.0, %v1383_v62 }
 0x35c   :  { %v1366_v13 = vpop.xlane.xlu0 %1365 }
 0x35d   :  { %v1384_v14 = vadd.f32 %v1374_v35, %v1366_v13  ;;  %v1415_v15 = vmul.f32 1.442695, %v1395_v56 }
 0x35f   :  { %v1396_v45 = vsub.f32 0.0, %v1384_v14 }
 0x361   :  { %v1417_v4 = vmul.f32 1.442695, %v1396_v45 }
 0x366   :  { %v1369_v47 = vpop.xlane.xlu0 %1368 }
 0x367   :  { %v1385_v23 = vadd.f32 %v1374_v35, %v1369_v47 }
 0x369   :  { %v1397_v7 = vsub.f32 0.0, %v1385_v23 }
 0x36b   :  { %v1342_v11 = vpop.xlane.xlu1 %1341  ;;  %v1419_v52 = vmul.f32 1.442695, %v1397_v7 }
 0x36c   :  { %v1376_v48 = vadd.f32 %v1374_v35, %v1342_v11 }
 0x36e   :  { %v1339_v44 = vpop.xlane.xlu0 %1338  ;;  %v1388_v33 = vsub.f32 0.0, %v1376_v48 }
 0x36f   :  { %v1375_v43 = vadd.f32 %v1374_v35, %v1339_v44  ;;  %v1351_v41 = vpop.xlane.xlu1 %1350 }
 0x370   :  { %v1379_v22 = vadd.f32 %v1374_v35, %v1351_v41  ;;  %v1401_v6 = vmul.f32 1.442695, %v1388_v33 }
 0x371   :  { %v1387_v37 = vsub.f32 0.0, %v1375_v43 }
 0x372   :  { %v1345_v31 = vpop.xlane.xlu0 %1344  ;;  %v1391_v29 = vsub.f32 0.0, %v1379_v22 }
 0x373   :  { %v1399_v8 = vmul.f32 1.442695, %v1387_v37  ;;  %v1377_v59 = vadd.f32 %v1374_v35, %v1345_v31 }
 0x374   :  { %v1407_v54 = vmul.f32 1.442695, %v1391_v29 }
 0x375   :  { %1800 = vpow2.f32 %v1399_v8  ;;  %v1389_v34 = vsub.f32 0.0, %v1377_v59 }
 0x376   :  { %v1357_v51 = vpop.xlane.xlu1 %1356  ;;  %1802 = vpow2.f32 %v1415_v15 }
 0x377   :  { %v1381_v57 = vadd.f32 %v1374_v35, %v1357_v51  ;;  %v1403_v42 = vmul.f32 1.442695, %v1389_v34  ;;  %1804 = vpow2.f32 %v1401_v6 }
 0x378   :  { %v1348_v63 = vpop.xlane.xlu0 %1347 }
 0x379   :  { %v1393_v16 = vsub.f32 0.0, %v1381_v57  ;;  %v1378_v5 = vadd.f32 %v1374_v35, %v1348_v63  ;;  %1806 = vpow2.f32 %v1403_v42 }
 0x37a   :  { %1808 = vpow2.f32 %v1417_v4 }
 0x37b   :  { %v1360_v19 = vpop.xlane.xlu1 %1359  ;;  %v1390_v40 = vsub.f32 0.0, %v1378_v5  ;;  %v1411_v55 = vmul.f32 1.442695, %v1393_v16  ;;  %1810 = vpow2.f32 %v1419_v52 }
 0x37c   :  { %v1382_v1 = vadd.f32 %v1374_v35, %v1360_v19  ;;  %v1354_v0 = vpop.xlane.xlu0 %1353  ;;  %1812 = vpow2.f32 %v1407_v54 }
 0x37d   :  { %v1405_v32 = vmul.f32 1.442695, %v1390_v40  ;;  %v1380_v12 = vadd.f32 %v1374_v35, %v1354_v0 }
 0x37e   :  { %v1394_v30 = vsub.f32 0.0, %v1382_v1 }
 0x37f   :  { %1814 = vpow2.f32 %v1405_v32  ;;  %v1392_v39 = vsub.f32 0.0, %v1380_v12  ;;  %v1801_v18 = vpop.eup %1800 }
 0x380   :  { %v1413_v2 = vmul.f32 1.442695, %v1394_v30  ;;  %1816 = vpow2.f32 %v1411_v55  ;;  %v1372_v36 = vpop.xlane.xlu0 %1371  ;;  %v1803_v25 = vpop.eup %1802  ;;  %v1423_v46 = vadd.f32 1.0, %v1801_v18 }
 0x381   :  { %v1409_v26 = vmul.f32 1.442695, %v1392_v39  ;;  %v1386_v50 = vadd.f32 %v1374_v35, %v1372_v36  ;;  %v1805_v17 = vpop.eup %1804  ;;  %v1431_v24 = vadd.f32 1.0, %v1803_v25 }
 0x382   :  { %1818 = vpow2.f32 %v1413_v2  ;;  %v1424_v28 = vadd.f32 1.0, %v1805_v17 }
 0x383   :  { %v1398_v61 = vsub.f32 0.0, %v1386_v50  ;;  %v1807_v53 = vpop.eup %1806  ;;  %1820 = vpow2.f32 %v1409_v26 }
 0x384   :  { %v1809_v20 = vpop.eup %1808  ;;  %v1425_v21 = vadd.f32 1.0, %v1807_v53  ;;  %1822 = vrcp.f32 %v1423_v46 }
 0x385   :  { %v1421_v60 = vmul.f32 1.442695, %v1398_v61  ;;  %v1811_v10 = vpop.eup %1810  ;;  %v1432_v38 = vadd.f32 1.0, %v1809_v20 }
 0x386   :  { %v1813_v9 = vpop.eup %1812  ;;  %v1433_v35 = vadd.f32 1.0, %v1811_v10 }
 0x387   :  { %1824 = vpow2.f32 %v1421_v60  ;;  %v1427_v47 = vadd.f32 1.0, %v1813_v9 }
 0x388   :  { %1826 = vrcp.f32 %v1425_v21 }
 0x389   :  { %v1815_v27 = vpop.eup %1814  ;;  %1828 = vrcp.f32 %v1424_v28 }
 0x38a   :  { %v1817_v49 = vpop.eup %1816  ;;  %v1426_v13 = vadd.f32 1.0, %v1815_v27 }
 0x38b   :  { %v1429_v62 = vadd.f32 1.0, %v1817_v49 }
 0x38c   :  { %v1819_v3 = vpop.eup %1818  ;;  %1830 = vrcp.f32 %v1426_v13 }
 0x38d   :  { %1832 = vrcp.f32 %v1431_v24  ;;  %v1430_v11 = vadd.f32 1.0, %v1819_v3  ;;  %v1821_v48 = vpop.eup %1820 }
 0x38e   :  { %1834 = vrcp.f32 %v1432_v38  ;;  %v1428_v56 = vadd.f32 1.0, %v1821_v48  ;;  %v1823_v14 = vpop.eup %1822 }
 0x38f   :  { %1836 = vrcp.f32 %v1433_v35  ;;  %v1464_v22 = vrot.slane %v1823_v14, %v2012_v58 }
 0x390   :  { %1838 = vrcp.f32 %v1427_v47 }
 0x391   :  { %1840 = vrcp.f32 %v1429_v62  ;;  %v1825_v44 = vpop.eup %1824 }
 0x392   :  { %1842 = vrcp.f32 %v1430_v11  ;;  %v1827_v23 = vpop.eup %1826  ;;  %v1434_v43 = vadd.f32 1.0, %v1825_v44 }
 0x393   :  { %1844 = vrcp.f32 %v1428_v56  ;;  %v1829_v41 = vpop.eup %1828  ;;  %v1472_v15 = vrot.slane %v1827_v23, %v2012_v58 }
 0x394   :  { %1846 = vrcp.f32 %v1434_v43  ;;  %v1468_v31 = vrot.slane %v1829_v41, %v2012_v58 }
 0x396   :  { %v1831_v33 = vpop.eup %1830  ;;  %v1509_v6 = vsel %vm1250_vm1, %v1468_v31, %v1464_v22 }
 0x397   :  { %v1833_v37 = vpop.eup %1832  ;;  %v1476_v7 = vrot.slane %v1831_v33, %v2012_v58  ;;  %v1510_v51 = vsel %vm1253_vm2, %v1472_v15, %v1509_v6 }
 0x398   :  { %v1835_v45 = vpop.eup %1834  ;;  %v1496_v5 = vrot.slane %v1833_v37, %v2012_v58 }
 0x399   :  { %v1837_v8 = vpop.eup %1836  ;;  %v1511_v57 = vsel %vm1256_vm3, %v1476_v7, %v1510_v51  ;;  %v1500_v63 = vrot.slane %v1835_v45, %v2012_v58 }
 0x39a   :  { %v1839_v59 = vpop.eup %1838  ;;  %v1504_v42 = vrot.slane %v1837_v8, %v2012_v58 }
 0x39b   :  { %v1841_v29 = vpop.eup %1840  ;;  %v1480_v52 = vrot.slane %v1839_v59, %v2012_v58  ;;  %v1520_v32 = vsel %vm1250_vm1, %v1500_v63, %v1496_v5 }
 0x39c   :  { %v1843_v34 = vpop.eup %1842  ;;  %v1488_v54 = vrot.slane %v1841_v29, %v2012_v58  ;;  %v1521_v12 = vsel %vm1253_vm2, %v1504_v42, %v1520_v32 }
 0x39d   :  { %v1845_v4 = vpop.eup %1844  ;;  %v1513_v19 = vsel %vm1512_vm5, %v1480_v52, %v1511_v57  ;;  %v1492_v1 = vrot.slane %v1843_v34, %v2012_v58 }
 0x39e   :  { %v1484_v16 = vrot.slane %v1845_v4, %v2012_v58  ;;  %v1847_v40 = vpop.eup %1846 }
 0x39f   :  { %v1508_v0 = vrot.slane %v1847_v40, %v2012_v58 }
 0x3a0   :  { %v1515_v55 = vsel %vm1514_vm6, %v1484_v16, %v1513_v19 }
 0x3a1   :  { %v1517_v30 = vsel %vm1516_vm7, %v1488_v54, %v1515_v55  ;;  %v1522_v39 = vsel %vm1256_vm3, %v1508_v0, %v1521_v12 }
 0x3a2   :  { %v1519_v2 = vsel %vm1518_vm8, %v1492_v1, %v1517_v30  ;;  %1528 = vst.msk [vmem:[%s2464_s7 + $0x8] sm:$0xf] %vm1527_vm10, %v1522_v39 }
 0x3a3   :  { %1526 = vst.msk [vmem:[%s2464_s7] sm:$0xff] %vm1525_vm9, %v1519_v2 }
 0x3a4   :  { %1533 = vsyncpa [#allocation4], 1 }
 0x3a5   :  { %1534 = vsyncpa [#allocation6], 1 }

</bundles_post_ra>
